<compile_context>
chip_gen: v6e
topology: v6e:2x2x1
jax: 0.10.0
libtpu: 0.0.40
codegen_flags: <defaults>
</compile_context>

<pallas_src>
import jax
import jax.numpy as jnp
from jax import lax
from jax.experimental import pallas as pl
from jax.experimental.pallas import tpu as pltpu

P_DROP = 0.2


def _multi_embedding_kernel(wid_ref, sid_ref, wtab_ref, stab_ref, ptab_ref,
                            dmask_ref, out_ref):
    """One (batch, token-block) tile.

    wid_ref / sid_ref : (TQ, 1)  int32 word / segment ids (VMEM)
    wtab_ref          : (V, D)   f32 word table (fully resident)
    stab_ref          : (Sg, D)  f32 segment table (fully resident)
    ptab_ref          : (TQ, D)  f32 positional rows for this token block
    dmask_ref         : (TQ, D)  f32 dropout mask, values in {0, 1/(1-p)}
    out_ref           : (TQ, D)  f32
    """
    tq, _ = out_ref.shape
    v = wtab_ref.shape[0]
    sg = stab_ref.shape[0]

    wid = wid_ref[...]                                    # (TQ, 1) int32
    sid = sid_ref[...]                                    # (TQ, 1) int32

    # Exact 0/1 one-hot row selectors; the gathers run as MXU matmuls.
    w_oh = jnp.where(wid == lax.broadcasted_iota(jnp.int32, (tq, v), 1),
                     1.0, 0.0).astype(jnp.float32)
    s_oh = jnp.where(sid == lax.broadcasted_iota(jnp.int32, (tq, sg), 1),
                     1.0, 0.0).astype(jnp.float32)

    emb = jnp.dot(w_oh, wtab_ref[...],
                  preferred_element_type=jnp.float32,
                  precision=lax.Precision.HIGHEST)
    emb = emb + jnp.dot(s_oh, stab_ref[...],
                        preferred_element_type=jnp.float32,
                        precision=lax.Precision.HIGHEST)
    emb = emb + ptab_ref[...]                             # contiguous positional add

    # Dropout fused into the single (full-lane-width) output store.
    out_ref[...] = emb * dmask_ref[...]


def _pick_token_block(seq_len):
    for cand in (512, 256, 128, 64, 32, 16, 8):
        if seq_len % cand == 0:
            return cand
    return seq_len          # whole sequence as one block (legal: equals full dim)


def multi_embedding(word_ids, w_tab, p_tab, s_tab, dropout_key,
                    mask_ids=None, p_drop=P_DROP):
    """Pallas equivalent of MultiEmbedding.forward(word_ids, mask_ids)."""
    B, S = word_ids.shape
    V, D = w_tab.shape
    Sg = s_tab.shape[0]
    if S > p_tab.shape[0]:
        raise ValueError(f"seq_len {S} exceeds pos_size {p_tab.shape[0]}")
    if mask_ids is None:
        mask_ids = jnp.zeros((B, S), dtype=jnp.int32)

    tq = _pick_token_block(S)
    n_t = S // tq
    grid = (B, n_t)

    wid = word_ids.astype(jnp.int32).reshape(B, S, 1)
    sid = mask_ids.astype(jnp.int32).reshape(B, S, 1)
    ptab = p_tab[:S]                                      # only rows 0..S-1 are used

    # Inverted-dropout keep/scale mask (F.dropout default: training=True).
    keep = jax.random.bernoulli(dropout_key, 1.0 - p_drop, (B, S, D))
    dmask = keep.astype(jnp.float32) * jnp.float32(1.0 / (1.0 - p_drop))

    # Advisory cost: mem-bound (tables + mask + output) with one-hot matmul flops.
    cost = pl.CostEstimate(
        flops=2 * B * S * (V + Sg) * D + 3 * B * S * D,
        transcendentals=0,
        bytes_accessed=4 * ((V + Sg + S) * D + 2 * B * S + 2 * B * S * D),
    )
    # Resident tables + double-buffered (ids, pos, mask, out) tiles + slack.
    vmem_limit = int(min(
        96 << 20,
        (V + Sg) * D * 4
        + 2 * (2 * tq * 128 * 4 + 3 * tq * D * 4)
        + (4 << 20),
    ))

    out = pl.pallas_call(
        _multi_embedding_kernel,
        out_shape=jax.ShapeDtypeStruct((B, S, D), jnp.float32),
        grid=grid,
        in_specs=[
            pl.BlockSpec((None, tq, 1), lambda b, t: (b, t, 0)),   # word ids
            pl.BlockSpec((None, tq, 1), lambda b, t: (b, t, 0)),   # segment ids
            pl.BlockSpec((V, D), lambda b, t: (0, 0)),             # word table
            pl.BlockSpec((Sg, D), lambda b, t: (0, 0)),            # segment table
            pl.BlockSpec((tq, D), lambda b, t: (t, 0)),            # positional rows
            pl.BlockSpec((None, tq, D), lambda b, t: (b, t, 0)),   # dropout mask
        ],
        out_specs=pl.BlockSpec((None, tq, D), lambda b, t: (b, t, 0)),
        compiler_params=pltpu.CompilerParams(
            dimension_semantics=("parallel", "parallel"),
            vmem_limit_bytes=vmem_limit),
        cost_estimate=cost,
    )(wid, sid, w_tab, s_tab, ptab, dmask)

    return out


if __name__ == "__main__":
    # Small, deterministic config consistent with the module's __init__ shapes.
    vocab_size, pos_size, seg_size, embedding_dim = 64, 32, 8, 128
    B, S = 2, 16

    key = jax.random.PRNGKey(0)
    k_w, k_p, k_s, k_ids, k_seg, k_d1, k_d2 = jax.random.split(key, 7)

    # nn.Embedding default init: N(0, 1)
    w_tab = jax.random.normal(k_w, (vocab_size, embedding_dim), dtype=jnp.float32)
    p_tab = jax.random.normal(k_p, (pos_size, embedding_dim), dtype=jnp.float32)
    s_tab = jax.random.normal(k_s, (seg_size, embedding_dim), dtype=jnp.float32)

    word_ids = jax.random.randint(k_ids, (B, S), 0, vocab_size, dtype=jnp.int32)
    mask_ids = jax.random.randint(k_seg, (B, S), 0, seg_size, dtype=jnp.int32)

    scale = 1.0 / (1.0 - P_DROP)
    pos_ids = jnp.broadcast_to(jnp.arange(S, dtype=jnp.int32), (B, S))

    # Explicit mask_ids path.
    out = jax.block_until_ready(
        multi_embedding(word_ids, w_tab, p_tab, s_tab, dropout_key=k_d1,
                        mask_ids=mask_ids))
    base = w_tab[word_ids] + s_tab[mask_ids] + p_tab[pos_ids]
    keep = jax.random.bernoulli(k_d1, 1.0 - P_DROP, (B, S, embedding_dim))
    ref = jnp.where(keep, base * scale, 0.0)
    assert out.shape == (B, S, embedding_dim) and out.dtype == jnp.float32
    assert jnp.allclose(out, ref, atol=1e-2, rtol=1e-2), \
        float(jnp.max(jnp.abs(out - ref)))

    # Default-mask path (mask_ids=None -> zeros), mirrors the PyTorch branch.
    out2 = jax.block_until_ready(
        multi_embedding(word_ids, w_tab, p_tab, s_tab, dropout_key=k_d2,
                        mask_ids=None))
    base2 = w_tab[word_ids] + s_tab[jnp.zeros((B, S), jnp.int32)] + p_tab[pos_ids]
    keep2 = jax.random.bernoulli(k_d2, 1.0 - P_DROP, (B, S, embedding_dim))
    ref2 = jnp.where(keep2, base2 * scale, 0.0)
    assert jnp.allclose(out2, ref2, atol=1e-2, rtol=1e-2)

    print("KERNEL_OK")
</pallas_src>

<mosaic_0001>
module attributes {stable_mosaic.version = 11 : i64} {
  func.func @_multi_embedding_kernel(%arg0: i32, %arg1: i32, %arg2: memref<1x16x1xi32, #tpu.memory_space<vmem>>, %arg3: memref<1x16x1xi32, #tpu.memory_space<vmem>>, %arg4: memref<64x128xf32, #tpu.memory_space<vmem>>, %arg5: memref<8x128xf32, #tpu.memory_space<vmem>>, %arg6: memref<16x128xf32, #tpu.memory_space<vmem>>, %arg7: memref<1x16x128xf32, #tpu.memory_space<vmem>>, %arg8: memref<1x16x128xf32, #tpu.memory_space<vmem>>) attributes {dimension_semantics = [#tpu.dimension_semantics<parallel>, #tpu.dimension_semantics<parallel>], iteration_bounds = array<i64: 2, 1>, scalar_prefetch = 0 : i64, scratch_operands = 0 : i64, tpu.core_type = #tpu.core_type<tc>, window_params = [{transform_indices = @transform_0, window_bounds = array<i64: 1, 16, 1>}, {transform_indices = @transform_1, window_bounds = array<i64: 1, 16, 1>}, {pipeline_mode = #tpu.pipeline_mode<synchronous>, transform_indices = @transform_2, window_bounds = array<i64: 64, 128>}, {pipeline_mode = #tpu.pipeline_mode<synchronous>, transform_indices = @transform_3, window_bounds = array<i64: 8, 128>}, {transform_indices = @transform_4, window_bounds = array<i64: 16, 128>}, {transform_indices = @transform_5, window_bounds = array<i64: 1, 16, 128>}, {transform_indices = @transform_6, window_bounds = array<i64: 1, 16, 128>}]} {
    %c0 = arith.constant 0 : index
    %c0_0 = arith.constant 0 : index
    %c0_1 = arith.constant 0 : index
    %0 = vector.load %arg2[%c0, %c0_0, %c0_1] : memref<1x16x1xi32, #tpu.memory_space<vmem>>, vector<1x16x1xi32>
    %1 = vector.shape_cast %0 : vector<1x16x1xi32> to vector<16x1xi32>
    %c0_2 = arith.constant 0 : index
    %c0_3 = arith.constant 0 : index
    %c0_4 = arith.constant 0 : index
    %2 = vector.load %arg3[%c0_2, %c0_3, %c0_4] : memref<1x16x1xi32, #tpu.memory_space<vmem>>, vector<1x16x1xi32>
    %3 = vector.shape_cast %2 : vector<1x16x1xi32> to vector<16x1xi32>
    %4 = tpu.iota {dimensions = array<i32: 1>} : vector<16x64xi32>
    %5 = vector.broadcast %1 : vector<16x1xi32> to vector<16x64xi32>
    %6 = arith.cmpi eq, %5, %4 : vector<16x64xi32>
    %cst = arith.constant 1.000000e+00 : f32
    %cst_5 = arith.constant 0.000000e+00 : f32
    %7 = vector.broadcast %cst : f32 to vector<16x64xf32>
    %8 = vector.broadcast %cst_5 : f32 to vector<16x64xf32>
    %9 = arith.select %6, %7, %8 : vector<16x64xi1>, vector<16x64xf32>
    %10 = tpu.iota {dimensions = array<i32: 1>} : vector<16x8xi32>
    %11 = vector.broadcast %3 : vector<16x1xi32> to vector<16x8xi32>
    %12 = arith.cmpi eq, %11, %10 : vector<16x8xi32>
    %cst_6 = arith.constant 1.000000e+00 : f32
    %cst_7 = arith.constant 0.000000e+00 : f32
    %13 = vector.broadcast %cst_6 : f32 to vector<16x8xf32>
    %14 = vector.broadcast %cst_7 : f32 to vector<16x8xf32>
    %15 = arith.select %12, %13, %14 : vector<16x8xi1>, vector<16x8xf32>
    %c0_8 = arith.constant 0 : index
    %c0_9 = arith.constant 0 : index
    %16 = vector.load %arg4[%c0_8, %c0_9] : memref<64x128xf32, #tpu.memory_space<vmem>>, vector<64x128xf32>
    %cst_10 = arith.constant dense<0.000000e+00> : vector<16x128xf32>
    %17 = tpu.matmul %9, %16, %cst_10 {dimension_numbers = #tpu.dot_dimension_numbers<[1], [0], [0], [1], [0, 0, 1, 1], [], []>, precision = #tpu.contract_precision<fp32>} : vector<16x64xf32>, vector<64x128xf32>, vector<16x128xf32> -> vector<16x128xf32>
    %c0_11 = arith.constant 0 : index
    %c0_12 = arith.constant 0 : index
    %18 = vector.load %arg5[%c0_11, %c0_12] : memref<8x128xf32, #tpu.memory_space<vmem>>, vector<8x128xf32>
    %cst_13 = arith.constant dense<0.000000e+00> : vector<16x128xf32>
    %19 = tpu.matmul %15, %18, %cst_13 {dimension_numbers = #tpu.dot_dimension_numbers<[1], [0], [0], [1], [0, 0, 1, 1], [], []>, precision = #tpu.contract_precision<fp32>} : vector<16x8xf32>, vector<8x128xf32>, vector<16x128xf32> -> vector<16x128xf32>
    %20 = arith.addf %17, %19 : vector<16x128xf32>
    %c0_14 = arith.constant 0 : index
    %c0_15 = arith.constant 0 : index
    %21 = vector.load %arg6[%c0_14, %c0_15] : memref<16x128xf32, #tpu.memory_space<vmem>>, vector<16x128xf32>
    %22 = arith.addf %20, %21 : vector<16x128xf32>
    %c0_16 = arith.constant 0 : index
    %c0_17 = arith.constant 0 : index
    %c0_18 = arith.constant 0 : index
    %23 = vector.load %arg7[%c0_16, %c0_17, %c0_18] : memref<1x16x128xf32, #tpu.memory_space<vmem>>, vector<1x16x128xf32>
    %24 = vector.shape_cast %23 : vector<1x16x128xf32> to vector<16x128xf32>
    %25 = arith.mulf %22, %24 : vector<16x128xf32>
    %c0_19 = arith.constant 0 : index
    %c0_20 = arith.constant 0 : index
    %c0_21 = arith.constant 0 : index
    %26 = vector.load %arg8[%c0_19, %c0_20, %c0_21] : memref<1x16x128xf32, #tpu.memory_space<vmem>>, vector<1x16x128xf32>
    %27 = vector.shape_cast %26 : vector<1x16x128xf32> to vector<16x128xf32>
    %28 = vector.shape_cast %25 : vector<16x128xf32> to vector<1x16x128xf32>
    tpu.vector_store %arg8[%c0_19, %c0_20, %c0_21], %28 {strides = array<i32>} : memref<1x16x128xf32, #tpu.memory_space<vmem>>, vector<1x16x128xf32>,
    return
  }
  func.func @transform_0(%arg0: i32, %arg1: i32) -> (i32, i32, i32) {
    %c0_i32 = arith.constant 0 : i32
    %c0_i32_0 = arith.constant 0 : i32
    return %arg0, %arg1, %c0_i32 : i32, i32, i32
  }
  func.func @transform_1(%arg0: i32, %arg1: i32) -> (i32, i32, i32) {
    %c0_i32 = arith.constant 0 : i32
    %c0_i32_0 = arith.constant 0 : i32
    return %arg0, %arg1, %c0_i32 : i32, i32, i32
  }
  func.func @transform_2(%arg0: i32, %arg1: i32) -> (i32, i32) {
    %c0_i32 = arith.constant 0 : i32
    %c0_i32_0 = arith.constant 0 : i32
    %c0_i32_1 = arith.constant 0 : i32
    return %c0_i32, %c0_i32_0 : i32, i32
  }
  func.func @transform_3(%arg0: i32, %arg1: i32) -> (i32, i32) {
    %c0_i32 = arith.constant 0 : i32
    %c0_i32_0 = arith.constant 0 : i32
    %c0_i32_1 = arith.constant 0 : i32
    return %c0_i32, %c0_i32_0 : i32, i32
  }
  func.func @transform_4(%arg0: i32, %arg1: i32) -> (i32, i32) {
    %c0_i32 = arith.constant 0 : i32
    %c0_i32_0 = arith.constant 0 : i32
    return %arg1, %c0_i32 : i32, i32
  }
  func.func @transform_5(%arg0: i32, %arg1: i32) -> (i32, i32, i32) {
    %c0_i32 = arith.constant 0 : i32
    %c0_i32_0 = arith.constant 0 : i32
    return %arg0, %arg1, %c0_i32 : i32, i32, i32
  }
  func.func @transform_6(%arg0: i32, %arg1: i32) -> (i32, i32, i32) {
    %c0_i32 = arith.constant 0 : i32
    %c0_i32_0 = arith.constant 0 : i32
    return %arg0, %arg1, %c0_i32 : i32, i32, i32
  }
}

</mosaic_0001>

<bundles_post_ra>
// kernel: tpu_custom_call.1
= control target key start
LH: loop header
LB: loop body
LE: loop exit
PB: predicated region body
PF: predicated region fallthrough
CT: control target
= control target key end

     0   :  { %s2656_s0 = inlined_call_operand.vmem [shape: s32[2,16,1], index: 0, kind: input, shape index: {}]   ;;  %s2657_s1 = inlined_call_operand.vmem [shape: s32[2,16,1], index: 1, kind: input, shape index: {}]   ;;  %s2658_s2 = inlined_call_operand.vmem [shape: f32[64,128], index: 2, kind: input, shape index: {}]   ;;  %s2659_s3 = inlined_call_operand.vmem [shape: f32[8,128], index: 3, kind: input, shape index: {}]   ;;  %s2660_s4 = inlined_call_operand.hbm [shape: f32[16,128], index: 4, kind: input, shape index: {}]   ;;  %s2661_s5 = inlined_call_operand.hbm [shape: f32[2,16,128], index: 5, kind: input, shape index: {}]   ;;  %s2662_s6 = inlined_call_operand.hbm [shape: f32[2,16,128], index: 6, kind: output, shape index: {}]  }
   0x1   :  { %2668 = sst [smem:[#allocation13_spill]] %s2660_s4 }
   0x2   :  { %11 = vsyncpa [#allocation3], 0 }
   0x3   :  { %12 = vsyncpa [#allocation6], 0 }
   0x4   :  { %14 = vsyncpa [#allocation6 + $0x1], 0 }
   0x5   :  { %15 = vsyncpa [#allocation4], 0 }
   0x6   :  { %17 = vsyncpa [#allocation4 + $0x1], 0  ;;  %s2191_s21 = smov 0   ;;  %s2193_s22 = smov 0  }
   0x7   :  { %s2195_s23 = smov 0   ;;  %s2197_s24 = smov 0  }
   0x8   :  { %s2199_s25 = smov 0   ;;  %s2201_s26 = smov 0  }
   0x9 LB: > { %2669 = sst [smem:[#allocation11_spill]] %s2141_s25  ;;  %s1667_s27 = sadd.s32 4294967295, %s2145_s26   ;;  %s2145_s26 = sphi %s2201_s26, %s23_s26   ;;  %s2141_s25 = sphi %s2199_s25, %s2687_s25   ;;  %s2137_s24 = sphi %s2197_s24, %s2686_s24   ;;  %s2133_s23 = sphi %s2195_s23, %s2690_s23   ;;  %s2129_s22 = sphi %s2193_s22, %s2689_s22   ;;  %s2125_s21 = sphi %s2191_s21, %s2688_s21  }
   0xa   : > { %s1668_s28 = sadd.s32 4294967294, %s2145_s26   ;;  %p181_p0 = scmp.ne.s32.totalorder %s2129_s22, %s2125_s21 }
   0xb   : > { %p2225_p1 = scmp.eq.s32.totalorder %s1667_s27, 0  ;;  %p2229_p2 = scmp.eq.s32.totalorder %s1667_s27, 1 }
   0xc   : > { %p213_p3 = scmp.eq.s32.totalorder %s1668_s28, 1  ;;  %p1669_p5 = scmp.ge.s32.totalorder %s2145_s26, 1 }
   0xd   : > { %p2235_p4 = por %p2225_p1, %p181_p0  ;;  %p220_p7 = scmp.lt.s32.totalorder %s2145_s26, 3 }
   0xe   : > { %p2240_p6 = por %p213_p3, %p181_p0  ;;  %s2147_s10 = smov [#allocation2]  }
   0xf   : > { %s2672_s7 = scalar_select %p2235_p4, 1, 0 }
  0x10   : > { %s2673_s8 = scalar_select %p2240_p6, 1, 0 }
  0x11   : > { %p2245_p8 = pnand %p1669_p5, %p220_p7  ;;  %s241_s11 = sshll.u32 %s2147_s10, 4  ;;  %s242_s11 = int_to_ptr.vmem [resolvable:$true] %s241_s11 }
  0x12   : > { %s35_s13 = sadd.s32 1, %s2141_s25  ;;  %s2018_s14 = scalar_lea.vmem %s242_s11, 256 }
  0x13   : > { %p1934_p9 = pneg %p2245_p8  ;;  %p2019_p13 = scmp.ne.s32.totalorder %s242_s11, %s2018_s14 }
  0x14   : > { %p2026_p5 = scmp.lt.s32.totalorder %s242_s11, %s242_s11  ;;  %p2027_p7 = scmp.lt.s32.totalorder %s2018_s14, %s2018_s14 }
  0x15   : > { %p2254_p11 = pnand %p1934_p9, %p2225_p1 }
  0x16   : > { %p2028_p6 = por %p2027_p7, %p2026_p5 }
  0x17   : > { %p2009_p12 = pneg %p2254_p11 }
  0x19   : > { %p2021_p0 = pnand %p2019_p13, %p2009_p12 }
  0x1b   : > { %p2022_p3 = pneg %p2021_p0 }
  0x1d   : > { %p2029_p4 = pnand %p2028_p6, %p2022_p3 }
  0x1f   : > { %2032 = shalt.err (!%p2029_p4)
}
  0x20   : > { %s2664_s15 = smov 128   ;;  %s2665_s16 = smov 8  }
  0x21   : > { %s2676_s4 = sld [smem:[#allocation13_spill]]  ;;  %p37_p4 = scmp.ge.s32.totalorder %s35_s13, 2 }
  0x22   : > { %s168_s19 = sadd.s32 1, %s2133_s23  ;;  %p175_p6 = scmp.ne.s32.totalorder %s2133_s23, %s2129_s22 }
  0x23   : > { %p176_p9 = scmp.eq.s32.totalorder %s2145_s26, 0  ;;  %s2692_s13 = smov (%p37_p4, %s35_s13), 0 }
  0x24   : > { %2677 = sst [smem:[#allocation12_spill]] %s2692_s13  ;;  %p2281_p13 = por %p2229_p2, %p175_p6 }
  0x25   : > { %p2275_p12 = por %p176_p9, %p175_p6  ;;  %s163_s28 = ssub.s32 %s2141_s25, %s2692_s13 }
  0x26   : > { %p1947_p0 = scmp.lt.s32.totalorder %s2145_s26, 2  ;;  %s281_s10 = sand.u32 1, %s2133_s23  }
  0x27   : > { %1937 = dma.hbm_to_vmem [thread:$0]  (!%p2254_p11), %s2676_s4, 256, %s242_s11, [#allocation3], %s2664_s15, %s2664_s15, %s2665_s16  }
  0x28   : > { %p166_p11 = scmp.eq.s32.totalorder %s163_s28, 0  ;;  %s1672_s11 = sshll.u32 %s281_s10, 4 }
  0x29   : > { %s1700_s14 = sshll.u32 %s2141_s25, 8  ;;  %s285_s16 = scalar_lea.vmem [#allocation5], %s1672_s11 }
  0x2a   : > { %s2290_s12 = scalar_select %p166_p11, %s2133_s23, %s168_s19  }
  0x2b   : > { %s293_s15 = scalar_lea.hbm %s2661_s5, %s1700_s14  ;;  %s294_s4 = sshll.u32 %s285_s16, 4  ;;  %s295_s4 = int_to_ptr.vmem [resolvable:$true] %s294_s4 }
  0x2c   : > { %p2298_p2 = pnand %p1947_p0, %p2275_p12  ;;  %s282_s13 = scalar_lea.sflag [#allocation6], %s281_s10 }
  0x2d   : > { %s2046_s28 = scalar_lea.vmem %s295_s4, 256  ;;  %s2150_s19 = smov [#allocation5]  }
  0x2e   : > { %p2035_p3 = pneg %p2298_p2  ;;  %p2047_p5 = scmp.ne.s32.totalorder %s295_s4, %s2046_s28 }
  0x2f   : > { %s2051_s25 = sshll.u32 %s2150_s19, 4  ;;  %s2052_s25 = int_to_ptr.vmem [resolvable:$false] %s2051_s25 }
  0x30   : > { %p2049_p7 = pnand %p2047_p5, %p2035_p3  ;;  %s2053_s14 = scalar_lea.vmem %s2052_s25, 512 }
  0x31   : > { %p2054_p6 = scmp.lt.s32.totalorder %s295_s4, %s2052_s25  ;;  %p2055_p9 = scmp.lt.s32.totalorder %s2053_s14, %s2046_s28 }
  0x32   : > { %p2050_p4 = pneg %p2049_p7 }
  0x33   : > { %p2056_p11 = por %p2055_p9, %p2054_p6 }
  0x35   : > { %p2057_p10 = pnand %p2056_p11, %p2050_p4 }
  0x37   : > { %2060 = shalt.err (!%p2057_p10)
}
  0x38   : > { %s2681_s16 = smov 8   ;;  %s2682_s20 = smov 128  }
  0x39   : > { %1941 = dma.hbm_to_vmem [thread:$0]  (!%p2298_p2), %s293_s15, 256, %s295_s4, %s282_s13, %s2682_s20, %s2682_s20, %s2681_s16  }
  0x3a   : > { %306 = sbr.rel (%p2245_p8) target bundleno = 492 (0x1ec), region = 44 }
  0x3f   : > { %2112 = dma.done.wait (%p2225_p1), [#allocation3], 256  }
  0x40   : > { %2114 = vsyncadd (%p2225_p1), [#allocation3], 4294967040  ;;  %s2316_s25 = sand.u32 1, %s2129_s22   ;;  %p2683_p10 = scmp.ne.s32.totalorder %s2672_s7, 0 }
  0x41   : > { %s1677_s10 = sshll.u32 %s2316_s25, 4  ;;  %s313_s11 = scalar_lea.sflag [#allocation6], %s2316_s25 }
  0x42   : > { %s2322_s4 = scalar_lea.vmem [#allocation5], %s1677_s10 }
  0x43   : > { %2116 = dma.done.wait (%p2683_p10), %s313_s11, 256  }
  0x44   : > { %2118 = vsyncadd (%p2683_p10), %s313_s11, 4294967040  ;;  %p364_p1 = scmp.lt.s32.totalorder %s2137_s24, 1  ;;  %v2151_v0 = vmov 0   ;;  %v420_v3 = vld [vmem:[%s2659_s3] sm:$0xff]  ;;  %v419_v11 = vld [vmem:[%s2658_s2 + $0x38] sm:$0xff]  ;;  %v390_v12 = vlaneseq  ;;  %vm421_vm0 = vcmask 64512  }
  0x45   : > { %2005 = vset.pattern.permute.xlu0 %v2151_v0  ;;  %2006 = vset.pattern.permute.xlu1 %v2151_v0  ;;  %v2339_v6 = vand.u32 4294901760, %v420_v3  ;;  %v2356_v13 = vand.u32 4294901760, %v419_v11  ;;  %v418_v14 = vld [vmem:[%s2658_s2 + $0x30] sm:$0xff]  ;;  %v417_v15 = vld [vmem:[%s2658_s2 + $0x28] sm:$0xff]  ;;  %v416_v20 = vld [vmem:[%s2658_s2 + $0x20] sm:$0xff]  ;;  %v2152_v25 = vmov 0.0  }
  0x46   : > { %s365_s29 = scalar_select %p364_p1, %s2137_s24, 1  ;;  %v2364_v16 = vand.u32 127, %v390_v12  ;;  %v2369_v18 = vand.u32 4294901760, %v418_v14  ;;  %v2371_v19 = vand.u32 4294901760, %v417_v15  ;;  %v415_v24 = vld [vmem:[%s2658_s2 + $0x18] sm:$0xff]  ;;  %v2389_v27 = vand.u32 4294901760, %v416_v20 }
  0x47   : > { %v2342_v7 = vsub.f32 %v420_v3, %v2339_v6  ;;  %1782 = vmatprep.subr.mxu0 %v2339_v6  ;;  %v2367_v17 = vsub.f32 %v419_v11, %v2356_v13  ;;  %v414_v30 = vld [vmem:[%s2658_s2 + $0x10] sm:$0xff]  ;;  %v2401_v33 = vand.u32 4294901760, %v415_v24  ;;  %v413_v36 = vld [vmem:[%s2658_s2 + $0x8] sm:$0xff]  ;;  %v412_v47 = vld [vmem:[%s2658_s2] sm:$0xff]  ;;  %vm917_vm4 = vcmask 523264   ;;  %s362_s20 = scalar_lea.vmem [#allocation7], %s1677_s10 }
  0x48   : > { %s1701_s9 = sshll.u32 %s365_s29, 4  ;;  %1783 = vmatpush3.msra.mxu0 %v2339_v6  ;;  %v2381_v23 = vsub.f32 %v418_v14, %v2369_v18  ;;  %v2396_v29 = vsub.f32 %v417_v15, %v2371_v19  ;;  %v2416_v39 = vsub.f32 %v416_v20, %v2389_v27  ;;  %v2418_v40 = vand.u32 4294901760, %v414_v30  ;;  %s1530_s11 = sshll.u32 %s362_s20, 4  ;;  %s2608_s11 = int_to_ptr.vmem [resolvable:$true] %s1530_s11 }
  0x49   : > { %s381_s17 = scalar_lea.vmem %s2657_s1, %s1701_s9  ;;  %s371_s28 = scalar_lea.vmem %s2656_s0, %s1701_s9  ;;  %v2346_v8 = vand.u32 4294901760, %v2342_v7  ;;  %1792 = vmatprep.subr.mxu0 %v2342_v7  ;;  %v2378_v22 = vand.u32 4294901760, %v2367_v17  ;;  %v2429_v45 = vsub.f32 %v415_v24, %v2401_v33  ;;  %v2431_v46 = vand.u32 4294901760, %v413_v36 }
  0x4a   : > { %v388_v1 = vld [vmem:[%s381_s17] sm:$0xff]  ;;  %v389_v4 = vld [vmem:[%s381_s17 + $0x8] sm:$0xff]  ;;  %v2407_v35 = vand.u32 4294901760, %v2381_v23  ;;  %v2425_v42 = vand.u32 4294901760, %v2396_v29  ;;  %v2440_v53 = vand.u32 4294901760, %v2416_v39  ;;  %v2443_v54 = vsub.f32 %v414_v30, %v2418_v40  ;;  %s1703_s29 = sshll.u32 %s2137_s24, 8 }
  0x4b   : > { %v386_v2 = vld [vmem:[%s371_s28] sm:$0xff]  ;;  %403 = vperm.xlu0 %2005, %v388_v1   ;;  %v387_v5 = vld [vmem:[%s371_s28 + $0x8] sm:$0xff]  ;;  %v548_v9 = vsub.f32 %v2342_v7, %v2346_v8  ;;  %v1037_v34 = vsub.f32 %v2367_v17, %v2378_v22  ;;  %v2447_v56 = vand.u32 4294901760, %v412_v47  ;;  %v2451_v58 = vand.u32 4294901760, %v2429_v45  ;;  %s2606_s15 = scalar_lea.hbm %s2662_s6, %s1703_s29  ;;  %s1515_s10 = scalar_lea.sflag [#allocation4], %s2316_s25 }
  0x4c   : > { %393 = vperm.xlu1 %2006, %v386_v2   ;;  %v1044_v49 = vsub.f32 %v2381_v23, %v2407_v35  ;;  %v1051_v55 = vsub.f32 %v2396_v29, %v2425_v42  ;;  %v2454_v59 = vsub.f32 %v413_v36, %v2431_v46  ;;  %v1058_v62 = vsub.f32 %v2416_v39, %v2440_v53  ;;  %s2061_s17 = scalar_lea.vmem %s2608_s11, 256  ;;  %s2153_s24 = smov [#allocation7]  }
  0x4d   : > { %v549_v10 = vand.u32 4294901760, %v548_v9  ;;  %v1038_v48 = vand.u32 4294901760, %v1037_v34  ;;  %v2462_v63 = vand.u32 4294901760, %v2443_v54  ;;  %v2468_v1 = vsub.f32 %v412_v47, %v2447_v56  ;;  %p2062_p8 = scmp.ne.s32.totalorder %s2608_s11, %s2061_s17 }
  0x4e   : > { %v1045_v61 = vand.u32 4294901760, %v1044_v49  ;;  %v1052_v2 = vand.u32 4294901760, %v1051_v55  ;;  %v1059_v9 = vand.u32 4294901760, %v1058_v62 }
  0x4f   : > { %406 = vperm.xlu0 %2005, %v389_v4   ;;  %1787 = vmatprep.subr.mxu1 %v549_v10  ;;  %v1065_v4 = vsub.f32 %v2429_v45, %v2451_v58  ;;  %v2485_v11 = vand.u32 4294901760, %v2468_v1  ;;  %p2063_p12 = pnand %p2062_p8, %p2281_p13 }
  0x50   : > { %396 = vperm.xlu1 %2006, %v387_v5   ;;  %1788 = vmatpush3.msra.mxu1 %v549_v10  ;;  %v2475_v5 = vand.u32 4294901760, %v2454_v59  ;;  %v1072_v10 = vsub.f32 %v2443_v54, %v2462_v63 }
  0x51   : > { %1797 = vmatprep.subr.mxu1 %v2339_v6  ;;  %v1086_v20 = vsub.f32 %v2468_v1, %v2485_v11  ;;  %p2064_p0 = pneg %p2063_p12 }
  0x52   : > { %v1079_v12 = vsub.f32 %v2454_v59, %v2475_v5 }
  0xc6   : > { %v404_v21 = vpop.permute.xlu0 %403 }
  0xc7   : > { %vm408_vm1 = vcmp.eq.s32.totalorder %v404_v21, %v2364_v16  ;;  %v394_v52 = vpop.permute.xlu1 %393 }
  0xc8   : > { %v2387_v26 = vsel %vm408_vm1, 1.0, %v2152_v25  ;;  %vm398_vm3 = vcmp.eq.s32.totalorder %v394_v52, %v2364_v16 }
  0xc9   : > { %v423_v28 = vsel %vm421_vm0, %v2387_v26, 0  ;;  %1789 = vmatprep.mubr.msk.f32.mxu1 %vm421_vm0, %v2387_v26  ;;  %v2465_v0 = vsel %vm398_vm3, 1.0, %v2152_v25 }
  0xca   : > { %v495_v31 = vsub.f32 %v423_v28, %v423_v28  ;;  %v407_v32 = vpop.permute.xlu0 %406 }
  0xcb   : > { %vm409_vm2 = vcmp.eq.s32.totalorder %v407_v32, %v2364_v16  ;;  %v397_v3 = vpop.permute.xlu1 %396 }
  0xcc   : > { %v2413_v37 = vsel %vm409_vm2, 1.0, %v2152_v25  ;;  %v496_v38 = vand.u32 4294901760, %v495_v31  ;;  %vm399_vm5 = vcmp.eq.s32.totalorder %v397_v3, %v2364_v16  ;;  %v1073_v16 = vand.u32 4294901760, %v1072_v10  ;;  %v1505_v3 = vld [vmem:[#allocation2 + $0x8] sm:$0xff] }
  0xcd   : > { %v426_v41 = vsel %vm421_vm0, %v2413_v37, 0  ;;  %1790 = vmatmul.mubr.msk.f32.vlgmr.msra.gmra.mxu1 %vm421_vm0, %v2413_v37  ;;  %v2493_v15 = vsel %vm399_vm5, 1.0, %v2152_v25  ;;  %v1087_v25 = vand.u32 4294901760, %v1086_v20  ;;  %v1509_v10 = vld [vmem:[%s2322_s4 + $0x8] sm:$0xff] }
  0xce   : > { %v505_v43 = vsub.f32 %v426_v41, %v426_v41  ;;  %1799 = vmatprep.mubr.f32.mxu1 %v496_v38  ;;  %1798 = vmatpush3.msra.mxu1 %v2339_v6  ;;  %v497_v44 = vsub.f32 %v495_v31, %v496_v38  ;;  %v922_v21 = vsel %vm917_vm4, %v2493_v15, 0 }
  0xcf   : > { %1807 = vmatprep.subr.mxu1 %v2339_v6 }
  0xd0   : > { %v498_v50 = vand.u32 4294901760, %v497_v44  ;;  %v506_v51 = vand.u32 4294901760, %v505_v43 }
  0xd2   : > { %1784 = vmatprep.mubr.f32.mxu0 %v498_v50  ;;  %1800 = vmatmul.mubr.f32.vlgmr.msra.gmra.mxu1 %v506_v51  ;;  %v507_v57 = vsub.f32 %v505_v43, %v506_v51 }
  0xd3   : > { %1809 = vmatprep.mubr.msk.f32.mxu1 %vm421_vm0, %v2387_v26  ;;  %1808 = vmatpush3.msra.mxu1 %v2339_v6  ;;  %v919_v6 = vsel %vm917_vm4, %v2465_v0, 0 }
  0xd4   : > { %1831 = vmatprep.subr.mxu1 %v1038_v48  ;;  %v508_v60 = vand.u32 4294901760, %v507_v57  ;;  %v998_v14 = vsub.f32 %v919_v6, %v919_v6 }
  0xd6   : > { %1785 = vmatmul.mubr.f32.vlgmr.msra.gmra.mxu0 %v508_v60  ;;  %1810 = vmatmul.mubr.msk.f32.vlgmr.msra.gmra.mxu1 %vm421_vm0, %v2413_v37  ;;  %v999_v24 = vand.u32 4294901760, %v998_v14 }
  0xd7   : > { %1793 = vmatpush3.msra.mxu0 %v2342_v7  ;;  %1832 = vmatpush3.msra.mxu1 %v1038_v48  ;;  %v1066_v7 = vand.u32 4294901760, %v1065_v4 }
  0xd8   : > { %1794 = vmatprep.mubr.f32.mxu0 %v495_v31  ;;  %1833 = vmatprep.subr.mxu1 %v1045_v61  ;;  %v1000_v28 = vsub.f32 %v998_v14, %v999_v24 }
  0xd9   : > { %1834 = vmatpush3.msra.mxu1 %v1045_v61  ;;  %1802 = vmatprep.subr.mxu0 %v2346_v8 }
  0xda   : > { %1835 = vmatprep.subr.mxu1 %v1052_v2  ;;  %1795 = vmatmul.mubr.f32.vlgmr.msra.gmra.mxu0 %v505_v43  ;;  %v1001_v31 = vand.u32 4294901760, %v1000_v28 }
  0xdb   : > { %1803 = vmatpush3.msra.mxu0 %v2346_v8  ;;  %1836 = vmatpush3.msra.mxu1 %v1052_v2  ;;  %v1080_v8 = vand.u32 4294901760, %v1079_v12 }
  0xdc   : > { %1804 = vmatprep.mubr.msk.f32.mxu0 %vm421_vm0, %v2387_v26  ;;  %1837 = vmatprep.subr.mxu1 %v1059_v9  ;;  %v2505_v26 = vsub.f32 %v922_v21, %v922_v21 }
  0xdd   : > { %1838 = vmatpush3.msra.mxu1 %v1059_v9  ;;  %1812 = vmatprep.subr.mxu0 %v2356_v13 }
  0xde   : > { %1839 = vmatprep.subr.mxu1 %v1066_v7  ;;  %1805 = vmatmul.mubr.msk.f32.vlgmr.msra.gmra.mxu0 %vm421_vm0, %v2413_v37  ;;  %v1009_v30 = vand.u32 4294901760, %v2505_v26 }
  0xdf   : > { %1813 = vmatpush3.msra.mxu0 %v2356_v13  ;;  %1840 = vmatpush3.msra.mxu1 %v1066_v7 }
  0xe0   : > { %1814 = vmatprep.subr.mxu0 %v2369_v18  ;;  %1841 = vmatprep.subr.mxu1 %v1073_v16  ;;  %v1010_v32 = vsub.f32 %v2505_v26, %v1009_v30 }
  0xe1   : > { %1815 = vmatpush3.msra.mxu0 %v2369_v18  ;;  %1842 = vmatpush3.msra.mxu1 %v1073_v16 }
  0xe2   : > { %1816 = vmatprep.subr.mxu0 %v2371_v19  ;;  %1843 = vmatprep.subr.mxu1 %v1080_v8  ;;  %v1011_v34 = vand.u32 4294901760, %v1010_v32 }
  0xe3   : > { %1847 = vmatprep.mubr.msk.f32.mxu1 %vm917_vm4, %v2465_v0  ;;  %1817 = vmatpush3.msra.mxu0 %v2371_v19 }
  0xe4   : > { %1844 = vmatpush3.msra.mxu1 %v1080_v8  ;;  %1818 = vmatprep.subr.mxu0 %v2389_v27 }
  0xe5   : > { %1845 = vmatprep.subr.mxu1 %v1087_v25  ;;  %1819 = vmatpush3.msra.mxu0 %v2389_v27 }
  0xe6   : > { %1846 = vmatpush3.msra.mxu1 %v1087_v25  ;;  %1820 = vmatprep.subr.mxu0 %v2401_v33 }
  0xe7   : > { %1848 = vmatmul.mubr.msk.f32.vlgmr.msra.gmra.mxu1 %vm917_vm4, %v2493_v15  ;;  %1869 = vmatprep.subr.mxu1 %v2356_v13 }
  0xe8   : > { %1821 = vmatpush3.msra.mxu0 %v2401_v33  ;;  %1870 = vmatpush3.msra.mxu1 %v2356_v13 }
  0xe9   : > { %1885 = vmatprep.mubr.f32.mxu1 %v999_v24  ;;  %1822 = vmatprep.subr.mxu0 %v2418_v40 }
  0xea   : > { %1871 = vmatprep.subr.mxu1 %v2369_v18  ;;  %1823 = vmatpush3.msra.mxu0 %v2418_v40 }
  0xeb   : > { %1828 = vmatprep.mubr.f32.mxu0 %v1001_v31  ;;  %1872 = vmatpush3.msra.mxu1 %v2369_v18 }
  0xec   : > { %1824 = vmatprep.subr.mxu0 %v2431_v46  ;;  %1873 = vmatprep.subr.mxu1 %v2371_v19 }
  0xed   : > { %1825 = vmatpush3.msra.mxu0 %v2431_v46  ;;  %1874 = vmatpush3.msra.mxu1 %v2371_v19 }
  0xee   : > { %1826 = vmatprep.subr.mxu0 %v2447_v56  ;;  %1875 = vmatprep.subr.mxu1 %v2389_v27 }
  0xef   : > { %1827 = vmatpush3.msra.mxu0 %v2447_v56  ;;  %1876 = vmatpush3.msra.mxu1 %v2389_v27 }
  0xf0   : > { %1829 = vmatmul.mubr.f32.vlgmr.msra.gmra.mxu0 %v1011_v34  ;;  %1850 = vmatprep.subr.mxu0 %v2367_v17 }
  0xf1   : > { %1877 = vmatprep.subr.mxu1 %v2401_v33  ;;  %1851 = vmatpush3.msra.mxu0 %v2367_v17 }
  0xf2   : > { %1866 = vmatprep.mubr.f32.mxu0 %v998_v14  ;;  %1878 = vmatpush3.msra.mxu1 %v2401_v33  ;;  %v1508_v14 = vld [vmem:[%s2322_s4] sm:$0xff]  ;;  %s2065_s4 = sshll.u32 %s2153_s24, 4  ;;  %s2066_s4 = int_to_ptr.vmem [resolvable:$false] %s2065_s4 }
  0xf3   : > { %1852 = vmatprep.subr.mxu0 %v2381_v23  ;;  %1879 = vmatprep.subr.mxu1 %v2418_v40  ;;  %s2067_s18 = scalar_lea.vmem %s2066_s4, 512  ;;  %p2068_p2 = scmp.lt.s32.totalorder %s2608_s11, %s2066_s4 }
  0xf4   : > { %1853 = vmatpush3.msra.mxu0 %v2381_v23  ;;  %1880 = vmatpush3.msra.mxu1 %v2418_v40  ;;  %p2069_p3 = scmp.lt.s32.totalorder %s2067_s18, %s2061_s17 }
  0xf5   : > { %1854 = vmatprep.subr.mxu0 %v2396_v29  ;;  %1881 = vmatprep.subr.mxu1 %v2431_v46 }
  0xf6   : > { %1855 = vmatpush3.msra.mxu0 %v2396_v29  ;;  %1882 = vmatpush3.msra.mxu1 %v2431_v46  ;;  %p2070_p5 = por %p2069_p3, %p2068_p2 }
  0xf7   : > { %1856 = vmatprep.subr.mxu0 %v2416_v39  ;;  %1883 = vmatprep.subr.mxu1 %v2447_v56 }
  0xf8   : > { %1857 = vmatpush3.msra.mxu0 %v2416_v39  ;;  %1884 = vmatpush3.msra.mxu1 %v2447_v56  ;;  %p2071_p7 = pnand %p2070_p5, %p2064_p0 }
  0xf9   : > { %1858 = vmatprep.subr.mxu0 %v2429_v45  ;;  %1886 = vmatmul.mubr.f32.vlgmr.msra.gmra.mxu1 %v1009_v30 }
  0xfa   : > { %1907 = vmatprep.subr.mxu1 %v2356_v13  ;;  %1859 = vmatpush3.msra.mxu0 %v2429_v45 }
  0xfb   : > { %1908 = vmatpush3.msra.mxu1 %v2356_v13  ;;  %1923 = vmatprep.mubr.msk.f32.mxu1 %vm917_vm4, %v2465_v0 }
  0xfc   : > { %1860 = vmatprep.subr.mxu0 %v2443_v54  ;;  %1909 = vmatprep.subr.mxu1 %v2369_v18 }
  0xfd   : > { %1861 = vmatpush3.msra.mxu0 %v2443_v54  ;;  %1910 = vmatpush3.msra.mxu1 %v2369_v18 }
  0xfe   : > { %1862 = vmatprep.subr.mxu0 %v2454_v59  ;;  %1911 = vmatprep.subr.mxu1 %v2371_v19 }
  0xff   : > { %1863 = vmatpush3.msra.mxu0 %v2454_v59  ;;  %1912 = vmatpush3.msra.mxu1 %v2371_v19 }
 0x100   : > { %1864 = vmatprep.subr.mxu0 %v2468_v1  ;;  %1913 = vmatprep.subr.mxu1 %v2389_v27 }
 0x101   : > { %1865 = vmatpush3.msra.mxu0 %v2468_v1  ;;  %1914 = vmatpush3.msra.mxu1 %v2389_v27 }
 0x102   : > { %1867 = vmatmul.mubr.f32.vlgmr.msra.gmra.mxu0 %v2505_v26  ;;  %1888 = vmatprep.subr.mxu0 %v2378_v22 }
 0x103   : > { %1915 = vmatprep.subr.mxu1 %v2401_v33  ;;  %1889 = vmatpush3.msra.mxu0 %v2378_v22 }
 0x104   : > { %1904 = vmatprep.mubr.msk.f32.mxu0 %vm917_vm4, %v2465_v0  ;;  %1916 = vmatpush3.msra.mxu1 %v2401_v33 }
 0x105   : > { %1890 = vmatprep.subr.mxu0 %v2407_v35  ;;  %1917 = vmatprep.subr.mxu1 %v2418_v40 }
 0x106   : > { %1891 = vmatpush3.msra.mxu0 %v2407_v35  ;;  %1918 = vmatpush3.msra.mxu1 %v2418_v40 }
 0x107   : > { %1892 = vmatprep.subr.mxu0 %v2425_v42  ;;  %1919 = vmatprep.subr.mxu1 %v2431_v46 }
 0x108   : > { %1893 = vmatpush3.msra.mxu0 %v2425_v42  ;;  %1920 = vmatpush3.msra.mxu1 %v2431_v46 }
 0x109   : > { %1894 = vmatprep.subr.mxu0 %v2440_v53  ;;  %1921 = vmatprep.subr.mxu1 %v2447_v56 }
 0x10a   : > { %1895 = vmatpush3.msra.mxu0 %v2440_v53  ;;  %1922 = vmatpush3.msra.mxu1 %v2447_v56 }
 0x10b   : > { %1896 = vmatprep.subr.mxu0 %v2451_v58  ;;  %1924 = vmatmul.mubr.msk.f32.vlgmr.msra.gmra.mxu1 %vm917_vm4, %v2493_v15 }
 0x10c   : > { %1897 = vmatpush3.msra.mxu0 %v2451_v58 }
 0x10d   : > { %1898 = vmatprep.subr.mxu0 %v2462_v63 }
 0x10e   : > { %1899 = vmatpush3.msra.mxu0 %v2462_v63 }
 0x10f   : > { %1900 = vmatprep.subr.mxu0 %v2475_v5 }
 0x110   : > { %1901 = vmatpush3.msra.mxu0 %v2475_v5 }
 0x111   : > { %1902 = vmatprep.subr.mxu0 %v2485_v11 }
 0x112   : > { %1903 = vmatpush3.msra.mxu0 %v2485_v11  ;;  %v1504_v11 = vld [vmem:[#allocation2] sm:$0xff] }
 0x113   : > { %1905 = vmatmul.mubr.msk.f32.vlgmr.msra.gmra.mxu0 %vm917_vm4, %v2493_v15 }
 0x18d   : > { %v1791_v17 = vpop.f32.mrf.mxu1 }
 0x18f   : > { %v586_v19 = vpop.f32.mrf.mxu1 }
 0x192   : > { %v1801_v27 = vpop.f32.mrf.mxu1 }
 0x194   : > { %v747_v37 = vpop.f32.mrf.mxu1 }
 0x196   : > { %v1786_v13 = vpop.f32.mrf.mxu0  ;;  %v1811_v41 = vpop.f32.mrf.mxu1 }
 0x197   : > { %v593_v23 = vadd.f32 %v1791_v17, %v1786_v13 }
 0x198   : > { %v500_v18 = vpop.f32.mrf.mxu0  ;;  %v907_v46 = vpop.f32.mrf.mxu1 }
 0x199   : > { %v587_v33 = vadd.f32 %v586_v19, %v500_v18 }
 0x19a   : > { %v1796_v22 = vpop.f32.mrf.mxu0 }
 0x19b   : > { %v674_v35 = vadd.f32 %v1796_v22, %v593_v23 }
 0x19c   : > { %v666_v29 = vpop.f32.mrf.mxu0 }
 0x19d   : > { %v667_v36 = vadd.f32 %v666_v29, %v587_v33  ;;  %v756_v39 = vadd.f32 %v1801_v27, %v674_v35 }
 0x19e   : > { %v1806_v38 = vpop.f32.mrf.mxu0 }
 0x19f   : > { %v748_v40 = vadd.f32 %v747_v37, %v667_v36  ;;  %v836_v43 = vadd.f32 %v1806_v38, %v756_v39 }
 0x1a0   : > { %v829_v42 = vpop.f32.mrf.mxu0 }
 0x1a1   : > { %v830_v45 = vadd.f32 %v829_v42, %v748_v40  ;;  %v914_v47 = vadd.f32 %v1811_v41, %v836_v43 }
 0x1a3   : > { %v908_v51 = vadd.f32 %v907_v46, %v830_v45 }
 0x1a7   : > { %v1849_v48 = vpop.f32.mrf.mxu1 }
 0x1a9   : > { %v1124_v54 = vpop.f32.mrf.mxu1 }
 0x1b0   : > { %v1830_v44 = vpop.f32.mrf.mxu0 }
 0x1b1   : > { %v1014_v50 = vadd.f32 %v1830_v44, %v914_v47 }
 0x1b2   : > { %v1003_v49 = vpop.f32.mrf.mxu0 }
 0x1b3   : > { %v1004_v53 = vadd.f32 %v1003_v49, %v908_v51  ;;  %v1131_v55 = vadd.f32 %v1849_v48, %v1014_v50 }
 0x1b5   : > { %v1125_v59 = vadd.f32 %v1124_v54, %v1004_v53 }
 0x1b9   : > { %v1887_v56 = vpop.f32.mrf.mxu1 }
 0x1bb   : > { %v1306_v61 = vpop.f32.mrf.mxu1 }
 0x1c2   : > { %v1868_v52 = vpop.f32.mrf.mxu0 }
 0x1c3   : > { %v1226_v58 = vadd.f32 %v1868_v52, %v1131_v55 }
 0x1c4   : > { %v1218_v57 = vpop.f32.mrf.mxu0 }
 0x1c5   : > { %v1219_v60 = vadd.f32 %v1218_v57, %v1125_v59  ;;  %v1315_v62 = vadd.f32 %v1887_v56, %v1226_v58 }
 0x1c7   : > { %v1307_v2 = vadd.f32 %v1306_v61, %v1219_v60 }
 0x1cb   : > { %v1925_v63 = vpop.f32.mrf.mxu1 }
 0x1cd   : > { %v1494_v9 = vpop.f32.mrf.mxu1 }
 0x1d3   : > { %v1906_v0 = vpop.f32.mrf.mxu0 }
 0x1d4   : > { %v1416_v1 = vadd.f32 %v1906_v0, %v1315_v62 }
 0x1d5   : > { %v1409_v4 = vpop.f32.mrf.mxu0 }
 0x1d6   : > { %v1501_v5 = vadd.f32 %v1925_v63, %v1416_v1  ;;  %v1410_v6 = vadd.f32 %v1409_v4, %v1307_v2 }
 0x1d8   : > { %v1507_v7 = vadd.f32 %v1505_v3, %v1501_v5  ;;  %v1495_v12 = vadd.f32 %v1494_v9, %v1410_v6 }
 0x1da   : > { %v1511_v15 = vmul.f32 %v1509_v10, %v1507_v7  ;;  %v1506_v16 = vadd.f32 %v1504_v11, %v1495_v12 }
 0x1dc   : > { %1513 = vst [vmem:[%s362_s20 + $0x8] sm:$0xff] %v1511_v15  ;;  %v1510_v20 = vmul.f32 %v1508_v14, %v1506_v16 }
 0x1de   : > { %1512 = vst [vmem:[%s362_s20] sm:$0xff] %v1510_v20 }
 0x1df   : > { %2074 = shalt.err (!%p2071_p7)
}
 0x1e0   : > { %s2075_s30 = scalar_lea.hbm %s2606_s15, 256  ;;  %s2079_s19 = scalar_lea.hbm %s2662_s6, 512 }
 0x1e1   : > { %p2076_p4 = scmp.ne.s32.totalorder %s2606_s15, %s2075_s30  ;;  %p2080_p11 = scmp.lt.s32.totalorder %s2606_s15, %s2662_s6 }
 0x1e2   : > { %p2081_p10 = scmp.lt.s32.totalorder %s2079_s19, %s2075_s30 }
 0x1e3   : > { %p2077_p6 = pnand %p2076_p4, %p2281_p13 }
 0x1e4   : > { %p2082_p1 = por %p2081_p10, %p2080_p11 }
 0x1e5   : > { %p2078_p9 = pneg %p2077_p6 }
 0x1e7   : > { %p2083_p8 = pnand %p2082_p1, %p2078_p9 }
 0x1e9   : > { %2086 = shalt.err (!%p2083_p8)
}
 0x1ea   : > { %s2154_s20 = smov 128   ;;  %s2155_s29 = smov 8  }
 0x1eb   : > { %1932 = dma.vmem_to_hbm [thread:$0]  (%p2281_p13), %s2608_s11, 256, %s2606_s15, %s1515_s10, %s2154_s20, %s2154_s20, %s2155_s29  }
 0x1ec PF: > { %s1545_s9 = sand.u32 1, %s2125_s21   ;;  %p2684_p12 = scmp.ne.s32.totalorder %s2673_s8, 0 }
 0x1ed   : > { %p2685_p0 = scmp.ge.s32.totalorder %s2145_s26, 2  ;;  %s1546_s13 = scalar_lea.sflag [#allocation4], %s1545_s9 }
 0x1ef   : > { %p1943_p2 = pnand %p2685_p0, %p2684_p12 }
 0x1f1   : > { %p1944_p3 = pneg %p1943_p2 }
 0x1f3   : > { %2120 = dma.done.wait (%p1944_p3), %s1546_s13, 256  }
 0x1f4   : > { %2122 = vsyncadd (%p1944_p3), %s1546_s13, 4294967040  ;;  %s23_s26 = sadd.s32 1, %s2145_s26   ;;  %s2686_s24 = sld [smem:[#allocation11_spill]] }
 0x1f5   : > { %p20_p5 = scmp.ge.s32.totalorder %s23_s26, 4   ;;  %s2687_s25 = sld [smem:[#allocation12_spill]] }
 0x1f6   : > { %s2688_s21 = smov %s2129_s22  ;;  %s2689_s22 = smov %s2133_s23 }
 0x1f7   : > { %s2690_s23 = smov %s2290_s12  ;;  %22 = sbr.rel (!%p20_p5) target bundleno = 9 (0x9), region = 101 }
 0x1fc   :  { %1551 = vsyncpa [#allocation3], 1 }
 0x1fd   :  { %1553 = vsyncpa [#allocation3 + $0x1], 1 }
 0x1fe   :  { %1554 = vsyncpa [#allocation6], 1 }
 0x1ff   :  { %1556 = vsyncpa [#allocation6 + $0x1], 1 }
 0x200   :  { %1557 = vsyncpa [#allocation4], 1 }
 0x201   :  { %1559 = vsyncpa [#allocation4 + $0x1], 1 }

</bundles_post_ra>
